<compile_context>
chip_gen: v7x
topology: tpu7x:2x2x1
jax: 0.10.0
libtpu: 0.0.40
codegen_flags: <defaults>
</compile_context>

<pallas_src>
import jax
import jax.numpy as jnp
from jax import lax
from jax.experimental import pallas as pl
from jax.experimental.pallas import tpu as pltpu


def _gate1_kernel(seq_ref, sc_ref, w_ref, b_ref, o_ref, x_ref):
    """Fused 1x1-conv gate.

    seq_ref, sc_ref, o_ref : (R, m_tile)   R = B*C (batch*channel rows, packed)
    w_ref                  : (R, 2R)       block-diagonal fused conv weight
    b_ref                  : (R, 1)        per-row bias (bias[o] repeated per batch)
    x_ref                  : (2R, m_tile)  VMEM scratch holding [seq_cluster; seq]
    """
    s = seq_ref[...]
    c = sc_ref[...]
    R = s.shape[0]

    # Stack the two operands in VMEM (replaces the PyTorch channel concat,
    # never hits HBM) so the conv is a single K = 2R dot on full sublane tiles.
    x_ref[0:R, :] = c
    x_ref[R:2 * R, :] = s

    logits = (
        jnp.dot(w_ref[...], x_ref[...],
                precision=lax.Precision.HIGHEST,      # K is tiny; keeps 1e-5 tol
                preferred_element_type=jnp.float32)
        + b_ref[...]
    )
    g = jax.nn.sigmoid(logits)                        # EUP work, hides under matmul
    # seq * g + seq_cluster * (1 - g)  ==  c + g * (s - c)
    o_ref[...] = (c + g * (s - c)).astype(o_ref.dtype)


def gate1_forward(seq, seq_cluster, w, b, *, m_tile=None, donate_seq=False):
    """gate1.forward.  seq, seq_cluster: (B, C, N, T); w: (C, 2C[,1,1]); b: (C,)."""
    B, C, N, T = seq.shape
    M = N * T
    R = B * C
    # Lane-dense stores: keep the last block dim a multiple of 128.
    assert M % 128 == 0, "pad N*T to a multiple of 128 before calling gate1_forward"

    w2 = jnp.reshape(w, (w.shape[0], -1))             # (C, 2C)
    assert w2.shape == (C, 2 * C)
    wc, ws = w2[:, :C], w2[:, C:]                     # seq_cluster half, seq half
    # Fold the batch into a block-diagonal weight -> one dot for the whole call.
    eye = jnp.eye(B, dtype=w2.dtype)
    w_bd = jnp.concatenate([jnp.kron(eye, wc), jnp.kron(eye, ws)], axis=1)   # (R, 2R)
    b_bd = jnp.tile(jnp.reshape(b, (1, C)), (B, 1)).reshape(R, 1)            # (R, 1)

    if m_tile is None:
        # Single grid step for small/medium M; otherwise 128-multiple lane tiles
        # so double-buffered VMEM stays well inside v7x's 64 MiB (32 MiB scoped).
        m_tile = M if M <= 4096 else 4096
        while M % m_tile != 0:
            m_tile //= 2
    assert m_tile % 128 == 0 and M % m_tile == 0

    seq2d = seq.reshape(R, M)                         # layout-preserving reshape
    sc2d = seq_cluster.reshape(R, M)

    out2d = pl.pallas_call(
        _gate1_kernel,
        out_shape=jax.ShapeDtypeStruct((R, M), seq.dtype),
        grid=(M // m_tile,),
        in_specs=[
            pl.BlockSpec((R, m_tile), lambda j: (0, j)),
            pl.BlockSpec((R, m_tile), lambda j: (0, j)),
            pl.BlockSpec((R, 2 * R), lambda j: (0, 0)),    # weights stay resident
            pl.BlockSpec((R, 1), lambda j: (0, 0)),
        ],
        out_specs=pl.BlockSpec((R, m_tile), lambda j: (0, j)),
        scratch_shapes=[pltpu.VMEM((2 * R, m_tile), seq.dtype)],
        compiler_params=pltpu.CompilerParams(
            dimension_semantics=("parallel",),             # lane tiles shard TCs on v7x
            vmem_limit_bytes=32 * 1024 * 1024),
        input_output_aliases=({0: 0} if donate_seq else {}),
    )(seq2d, sc2d, w_bd, b_bd)
    return out2d.reshape(B, C, N, T)


# ---------------------------------------------------------------------------
# Pure-JAX reference (mirrors the PyTorch forward) for validation.
# ---------------------------------------------------------------------------
def reference_forward(seq, seq_cluster, w, b):
    x = jnp.concatenate([seq_cluster, seq], axis=1)          # (B, 2C, N, T)
    w2 = jnp.reshape(w, (w.shape[0], -1))
    logits = jnp.einsum("oi,bint->bont", w2, x,
                        precision="highest") + b[None, :, None, None]
    g = jax.nn.sigmoid(logits)
    return seq * g + seq_cluster * (1.0 - g)


# ---------------------------------------------------------------------------
if __name__ == "__main__":
    B, C, N, T = 2, 4, 16, 16        # module's c_in == 2*C == 8
    key = jax.random.PRNGKey(0)
    k1, k2, k3, k4 = jax.random.split(key, 4)

    seq = jax.random.normal(k1, (B, C, N, T), jnp.float32)
    seq_cluster = jax.random.normal(k2, (B, C, N, T), jnp.float32)
    w = jax.random.uniform(k3, (C, 2 * C, 1, 1), jnp.float32, -0.3, 0.3)
    b = jax.random.uniform(k4, (C,), jnp.float32, -0.3, 0.3)

    out = jax.block_until_ready(gate1_forward(seq, seq_cluster, w, b))
    ref = reference_forward(seq, seq_cluster, w, b)

    assert out.shape == (B, C, N, T), out.shape
    err = float(jnp.max(jnp.abs(out - ref)))
    assert err < 1e-5, f"max abs diff vs reference: {err}"
    print("KERNEL_OK")
</pallas_src>

<mosaic_0001>
module attributes {stable_mosaic.version = 11 : i64} {
  func.func @_gate1_kernel(%arg0: i32, %arg1: memref<8x256xf32, #tpu.memory_space<vmem>>, %arg2: memref<8x256xf32, #tpu.memory_space<vmem>>, %arg3: memref<8x16xf32, #tpu.memory_space<vmem>>, %arg4: memref<8x1xf32, #tpu.memory_space<vmem>>, %arg5: memref<8x256xf32, #tpu.memory_space<vmem>>, %arg6: memref<16x256xf32, #tpu.memory_space<vmem>>) attributes {dimension_semantics = [#tpu.dimension_semantics<parallel>], iteration_bounds = array<i64: 1>, scalar_prefetch = 0 : i64, scratch_operands = 1 : i64, tpu.core_type = #tpu.core_type<tc>, window_params = [{transform_indices = @transform_0, window_bounds = array<i64: 8, 256>}, {transform_indices = @transform_1, window_bounds = array<i64: 8, 256>}, {pipeline_mode = #tpu.pipeline_mode<synchronous>, transform_indices = @transform_2, window_bounds = array<i64: 8, 16>}, {pipeline_mode = #tpu.pipeline_mode<synchronous>, transform_indices = @transform_3, window_bounds = array<i64: 8, 1>}, {transform_indices = @transform_4, window_bounds = array<i64: 8, 256>}]} {
    %c0 = arith.constant 0 : index
    %c0_0 = arith.constant 0 : index
    %0 = vector.load %arg1[%c0, %c0_0] : memref<8x256xf32, #tpu.memory_space<vmem>>, vector<8x256xf32>
    %c0_1 = arith.constant 0 : index
    %c0_2 = arith.constant 0 : index
    %1 = vector.load %arg2[%c0_1, %c0_2] : memref<8x256xf32, #tpu.memory_space<vmem>>, vector<8x256xf32>
    %c0_3 = arith.constant 0 : index
    %c0_4 = arith.constant 0 : index
    %2 = vector.load %arg6[%c0_3, %c0_4] : memref<16x256xf32, #tpu.memory_space<vmem>>, vector<8x256xf32>
    tpu.vector_store %arg6[%c0_3, %c0_4], %1 {strides = array<i32>} : memref<16x256xf32, #tpu.memory_space<vmem>>, vector<8x256xf32>,
    %c8 = arith.constant 8 : index
    %c0_5 = arith.constant 0 : index
    %3 = vector.load %arg6[%c8, %c0_5] : memref<16x256xf32, #tpu.memory_space<vmem>>, vector<8x256xf32>
    tpu.vector_store %arg6[%c8, %c0_5], %0 {strides = array<i32>} : memref<16x256xf32, #tpu.memory_space<vmem>>, vector<8x256xf32>,
    %c0_6 = arith.constant 0 : index
    %c0_7 = arith.constant 0 : index
    %4 = vector.load %arg3[%c0_6, %c0_7] : memref<8x16xf32, #tpu.memory_space<vmem>>, vector<8x16xf32>
    %c0_8 = arith.constant 0 : index
    %c0_9 = arith.constant 0 : index
    %5 = vector.load %arg6[%c0_8, %c0_9] : memref<16x256xf32, #tpu.memory_space<vmem>>, vector<16x256xf32>
    %cst = arith.constant dense<0.000000e+00> : vector<8x256xf32>
    %6 = tpu.matmul %4, %5, %cst {dimension_numbers = #tpu.dot_dimension_numbers<[1], [0], [0], [1], [0, 0, 1, 1], [], []>, precision = #tpu.contract_precision<fp32>} : vector<8x16xf32>, vector<16x256xf32>, vector<8x256xf32> -> vector<8x256xf32>
    %c0_10 = arith.constant 0 : index
    %c0_11 = arith.constant 0 : index
    %7 = vector.load %arg4[%c0_10, %c0_11] : memref<8x1xf32, #tpu.memory_space<vmem>>, vector<8x1xf32>
    %8 = vector.broadcast %7 : vector<8x1xf32> to vector<8x256xf32>
    %9 = arith.addf %6, %8 : vector<8x256xf32>
    %10 = arith.negf %9 : vector<8x256xf32>
    %11 = math.exp %10 : vector<8x256xf32>
    %cst_12 = arith.constant 1.000000e+00 : f32
    %12 = vector.broadcast %cst_12 : f32 to vector<8x256xf32>
    %13 = arith.addf %12, %11 : vector<8x256xf32>
    %14 = arith.divf %12, %13 : vector<8x256xf32>
    %15 = arith.subf %0, %1 : vector<8x256xf32>
    %16 = arith.mulf %14, %15 : vector<8x256xf32>
    %17 = arith.addf %1, %16 : vector<8x256xf32>
    %c0_13 = arith.constant 0 : index
    %c0_14 = arith.constant 0 : index
    %18 = vector.load %arg5[%c0_13, %c0_14] : memref<8x256xf32, #tpu.memory_space<vmem>>, vector<8x256xf32>
    tpu.vector_store %arg5[%c0_13, %c0_14], %17 {strides = array<i32>} : memref<8x256xf32, #tpu.memory_space<vmem>>, vector<8x256xf32>,
    return
  }
  func.func @transform_0(%arg0: i32) -> (i32, i32) {
    %c0_i32 = arith.constant 0 : i32
    %c0_i32_0 = arith.constant 0 : i32
    return %c0_i32, %arg0 : i32, i32
  }
  func.func @transform_1(%arg0: i32) -> (i32, i32) {
    %c0_i32 = arith.constant 0 : i32
    %c0_i32_0 = arith.constant 0 : i32
    return %c0_i32, %arg0 : i32, i32
  }
  func.func @transform_2(%arg0: i32) -> (i32, i32) {
    %c0_i32 = arith.constant 0 : i32
    %c0_i32_0 = arith.constant 0 : i32
    %c0_i32_1 = arith.constant 0 : i32
    return %c0_i32, %c0_i32_0 : i32, i32
  }
  func.func @transform_3(%arg0: i32) -> (i32, i32) {
    %c0_i32 = arith.constant 0 : i32
    %c0_i32_0 = arith.constant 0 : i32
    %c0_i32_1 = arith.constant 0 : i32
    return %c0_i32, %c0_i32_0 : i32, i32
  }
  func.func @transform_4(%arg0: i32) -> (i32, i32) {
    %c0_i32 = arith.constant 0 : i32
    %c0_i32_0 = arith.constant 0 : i32
    return %c0_i32, %arg0 : i32, i32
  }
}

</mosaic_0001>

<bundles_post_ra>
// kernel: tpu_custom_call.1
= control target key start
LH: loop header
LB: loop body
LE: loop exit
PB: predicated region body
PF: predicated region fallthrough
CT: control target
= control target key end

     0   :  { %9 = vsyncpa [#allocation4], 0  ;;  %s816_s0 = inlined_call_operand.hbm [shape: f32[8,256], index: 0, kind: input, shape index: {}]   ;;  %s817_s1 = inlined_call_operand.hbm [shape: f32[8,256], index: 1, kind: input, shape index: {}]   ;;  %s818_s2 = inlined_call_operand.vmem [shape: f32[8,16], index: 2, kind: input, shape index: {}]   ;;  %s819_s3 = inlined_call_operand.vmem [shape: f32[8,1], index: 3, kind: input, shape index: {}]   ;;  %s820_s4 = inlined_call_operand.hbm [shape: f32[8,256], index: 4, kind: output, shape index: {}]  }
   0x1   :  { %10 = vsyncpa [#allocation7], 0 }
   0x2   :  { %11 = vsyncpa [#allocation5], 0  ;;  %s716_s15 = smov [#allocation3]   ;;  %s717_s17 = smov [#allocation6]  }
   0x3   :  { %s18_s16 = sshll.u32 %s716_s15, 4  ;;  %s28_s18 = sshll.u32 %s717_s17, 4  ;;  %s19_s16 = int_to_ptr.vmem [resolvable:$true] %s18_s16  ;;  %s29_s18 = int_to_ptr.vmem [resolvable:$true] %s28_s18 }
   0x4   :  { %s644_s21 = scalar_lea.hbm %s816_s0, 256 }
   0x5   :  { %p645_p0 = scmp.ne.s32.totalorder %s816_s0, %s644_s21  ;;  %p648_p1 = scmp.lt.u32.totalorder %s644_s21, %s816_s0 }
   0x7   :  { %p650_p2 = pnand %p648_p1, %p645_p0 }
   0x9   :  { %653 = shalt.err (!%p650_p2)
}
   0xa   :  { %s654_s26 = scalar_lea.vmem %s19_s16, 256  ;;  %p659_p4 = scmp.lt.s32.totalorder %s19_s16, %s19_s16 }
   0xb   :  { %p655_p3 = scmp.ne.s32.totalorder %s19_s16, %s654_s26  ;;  %p660_p5 = scmp.lt.s32.totalorder %s654_s26, %s654_s26 }
   0xd   :  { %p661_p6 = por %p660_p5, %p659_p4 }
   0xf   :  { %p662_p7 = pnand %p661_p6, %p655_p3 }
  0x11   :  { %665 = shalt.err (!%p662_p7)
}
  0x12   :  { %21 = dma.hbm_to_vmem [thread:$0]  %s816_s0, 256, %s19_s16, [#allocation4]  }
  0x13   :  { %s666_s5 = scalar_lea.hbm %s817_s1, 256 }
  0x14   :  { %p667_p8 = scmp.ne.s32.totalorder %s817_s1, %s666_s5  ;;  %p670_p9 = scmp.lt.u32.totalorder %s666_s5, %s817_s1 }
  0x16   :  { %p672_p10 = pnand %p670_p9, %p667_p8 }
  0x18   :  { %675 = shalt.err (!%p672_p10)
}
  0x19   :  { %s676_s10 = scalar_lea.vmem %s29_s18, 256  ;;  %p681_p12 = scmp.lt.s32.totalorder %s29_s18, %s29_s18 }
  0x1a   :  { %p677_p11 = scmp.ne.s32.totalorder %s29_s18, %s676_s10  ;;  %p682_p13 = scmp.lt.s32.totalorder %s676_s10, %s676_s10 }
  0x1c   :  { %p683_p0 = por %p682_p13, %p681_p12 }
  0x1e   :  { %p684_p1 = pnand %p683_p0, %p677_p11 }
  0x20   :  { %687 = shalt.err (!%p684_p1)
}
  0x21   :  { %31 = dma.hbm_to_vmem [thread:$0]  %s817_s1, 256, %s29_s18, [#allocation7]  }
  0x22   :  { %710 = dma.done.wait [#allocation4], 256  }
  0x23   :  { %711 = vsyncadd [#allocation4], 4294967040 }
  0x24   :  { %712 = dma.done.wait [#allocation7], 256  }
  0x25   :  { %713 = vsyncadd [#allocation7], 4294967040  ;;  %v718_v0 = vmov 0.0   ;;  %v719_v1 = vmov 0   ;;  %vm61_vm0 = vcmask 130048   ;;  %v772_v2 = vld [vmem:[#allocation3 + $0x8] sm:$0xff] }
  0x26   :  { %386 = vmatprep.mubr.f32.mxu0 %v718_v0  ;;  %133 = vmatprep.mubr.f32.mxu1 %v718_v0  ;;  %v774_v3 = vld [vmem:[#allocation6 + $0x8] sm:$0xff]  ;;  %v776_v4 = vld [vmem:[#allocation3] sm:$0xff]  ;;  %v69_v6 = vand.u32 4294901760, %v772_v2  ;;  %v780_v7 = vld [vmem:[#allocation6] sm:$0xff] }
  0x27   :  { %635 = vset.pattern.permute.xlu0 %v719_v1  ;;  %v65_v5 = vand.u32 4294901760, %v774_v3  ;;  %v71_v8 = vand.u32 4294901760, %v776_v4  ;;  %v50_v9 = vld [vmem:[%s818_s2] sm:$0xff]  ;;  %v67_v11 = vand.u32 4294901760, %v780_v7  ;;  %v568_v57 = vsub.f32 %v776_v4, %v780_v7  ;;  %s720_s2 = smov [#allocation8]  }
  0x28   :  { %v55_v10 = vld [vmem:[%s819_s3] sm:$0xff]  ;;  %v63_v12 = vsel %vm61_vm0, %v50_v9, 0  ;;  %v158_v15 = vsub.f32 %v772_v2, %v69_v6  ;;  %v569_v58 = vsub.f32 %v772_v2, %v774_v3  ;;  %s582_s3 = sshll.u32 %s720_s2, 4  ;;  %s583_s3 = int_to_ptr.vmem [resolvable:$true] %s582_s3 }
  0x29   :  { %58 = vperm.xlu0 %635, %v55_v10   ;;  %v594_v13 = vpack.c.bf16 %v69_v6, %v65_v5  ;;  %v146_v14 = vsub.f32 %v774_v3, %v65_v5  ;;  %v164_v16 = vsub.f32 %v776_v4, %v71_v8  ;;  %v596_v17 = vpack.c.bf16 %v71_v8, %v67_v11  ;;  %s688_s15 = scalar_lea.vmem %s583_s3, 256  ;;  %p693_p3 = scmp.lt.s32.totalorder %s583_s3, %s583_s3 }
  0x2a   :  { %v152_v18 = vsub.f32 %v780_v7, %v67_v11  ;;  %v134_v19 = vand.u32 4294901760, %v63_v12  ;;  %v159_v21 = vand.u32 4294901760, %v158_v15  ;;  %p689_p2 = scmp.ne.s32.totalorder %s583_s3, %s688_s15  ;;  %p694_p4 = scmp.lt.s32.totalorder %s688_s15, %s688_s15 }
  0x2b   :  { %607 = vmatprep.subr.bf16.mxu0 %v594_v13  ;;  %595 = vmatprep.subr.bf16.mxu1 %v594_v13  ;;  %v147_v20 = vand.u32 4294901760, %v146_v14  ;;  %v165_v22 = vand.u32 4294901760, %v164_v16  ;;  %v602_v40 = vpack.c.bf16 %v158_v15, %v146_v14 }
  0x2c   :  { %609 = vmatpush1.bf16.msra.mxu0 %v596_v17  ;;  %597 = vmatpush1.bf16.msra.mxu1 %v596_v17  ;;  %v135_v23 = vsub.f32 %v63_v12, %v134_v19  ;;  %v153_v24 = vand.u32 4294901760, %v152_v18  ;;  %v160_v26 = vsub.f32 %v158_v15, %v159_v21  ;;  %v604_v41 = vpack.c.bf16 %v164_v16, %v152_v18  ;;  %p695_p5 = por %p694_p4, %p693_p3 }
  0x2d   :  { %v148_v25 = vsub.f32 %v146_v14, %v147_v20  ;;  %v610_v27 = vpack.c.bf16 %v159_v21, %v147_v20  ;;  %v166_v28 = vsub.f32 %v164_v16, %v165_v22 }
  0x2e   :  { %v136_v29 = vand.u32 4294901760, %v135_v23  ;;  %v154_v30 = vsub.f32 %v152_v18, %v153_v24  ;;  %v612_v31 = vpack.c.bf16 %v165_v22, %v153_v24  ;;  %v161_v33 = vand.u32 4294901760, %v160_v26  ;;  %p696_p6 = pnand %p695_p5, %p689_p2 }
  0x2f   :  { %v149_v32 = vand.u32 4294901760, %v148_v25  ;;  %611 = vmatprep.subr.bf16.mxu0 %v610_v27  ;;  %v167_v34 = vand.u32 4294901760, %v166_v28 }
  0x30   :  { %390 = vmatmul.mubr.f32.vlgmr.msra.gmra.mrb[0].mxu0 %v136_v29  ;;  %v137_v35 = vsub.f32 %v135_v23, %v136_v29  ;;  %v155_v36 = vand.u32 4294901760, %v154_v30 }
  0x31   :  { %v598_v37 = vpack.c.bf16 %v161_v33, %v149_v32  ;;  %613 = vmatpush1.bf16.msra.mxu0 %v612_v31  ;;  %472 = vmatprep.mubr.f32.mxu0 %v718_v0 }
  0x32   :  { %v138_v38 = vand.u32 4294901760, %v137_v35  ;;  %v600_v39 = vpack.c.bf16 %v167_v34, %v155_v36  ;;  %615 = vmatprep.subr.bf16.mxu0 %v594_v13 }
  0x33   :  { %599 = vmatprep.subr.bf16.mxu1 %v598_v37 }
  0x34   :  { %139 = vmatmul.mubr.f32.vlgmr.msra.gmra.mrb[0].mxu1 %v138_v38 }
  0x35   :  { %601 = vmatpush1.bf16.msra.mxu1 %v600_v39  ;;  %229 = vmatprep.mubr.f32.mxu1 %v718_v0 }
  0x36   :  { %603 = vmatprep.subr.bf16.mxu1 %v602_v40 }
  0x38   :  { %474 = vmatmul.mubr.f32.vlgmr.msra.gmra.mrb[0].mxu0 %v134_v19 }
  0x39   :  { %617 = vmatpush1.bf16.msra.mxu0 %v596_v17  ;;  %548 = vmatprep.mubr.f32.mxu0 %v718_v0 }
  0x3c   :  { %231 = vmatmul.mubr.f32.vlgmr.msra.gmra.mrb[0].mxu1 %v134_v19 }
  0x3d   :  { %605 = vmatpush1.bf16.msra.mxu1 %v604_v41  ;;  %309 = vmatprep.mubr.f32.mxu1 %v718_v0 }
  0x40   :  { %550 = vmatmul.mubr.f32.vlgmr.msra.gmra.mrb[0].mxu0 %v134_v19 }
  0x44   :  { %312 = vmatmul.mubr.f32.vlgmr.msra.gmra.mrb[0].mxu1 %v135_v23 }
  0xa8   :  { %v59_v44 = vpop.permute.xlu0 %58 }
 0x113   :  { %v551_v42 = vpop.f32.mrb[0].mxu0 }
 0x114   :  { %v553_v43 = vpop.f32.mrb[1].mxu0 }
 0x117   :  { %v313_v45 = vpop.f32.mrb[0].mxu1 }
 0x118   :  { %v618_v46 = vadd.f32 %v313_v45, %v59_v44  ;;  %v315_v47 = vpop.f32.mrb[1].mxu1 }
 0x119   :  { %v620_v48 = vadd.f32 %v315_v47, %v59_v44 }
 0x11a   :  { %v619_v49 = vadd.f32 %v618_v46, %v551_v42 }
 0x11b   :  { %v621_v50 = vadd.f32 %v620_v48, %v553_v43 }
 0x11c   :  { %v592_v51 = vmul.f32 -1.442695, %v619_v49 }
 0x11d   :  { %v593_v52 = vmul.f32 -1.442695, %v621_v50 }
 0x11e   :  { %636 = vpow2.f32 %v592_v51 }
 0x11f   :  { %638 = vpow2.f32 %v593_v52 }
 0x128   :  { %v637_v53 = vpop.eup %636 }
 0x129   :  { %v639_v54 = vpop.eup %638  ;;  %v562_v55 = vadd.f32 1.0, %v637_v53 }
 0x12a   :  { %v563_v56 = vadd.f32 1.0, %v639_v54 }
 0x12b   :  { %640 = vrcp.f32 %v562_v55 }
 0x12c   :  { %642 = vrcp.f32 %v563_v56 }
 0x135   :  { %v641_v59 = vpop.eup %640 }
 0x136   :  { %v643_v60 = vpop.eup %642  ;;  %v570_v61 = vmul.f32 %v641_v59, %v568_v57 }
 0x137   :  { %v571_v62 = vmul.f32 %v643_v60, %v569_v58 }
 0x138   :  { %v572_v63 = vadd.f32 %v570_v61, %v780_v7 }
 0x139   :  { %v573_v0 = vadd.f32 %v571_v62, %v774_v3 }
 0x13a   :  { %574 = vst [vmem:[#allocation8] sm:$0xff] %v572_v63 }
 0x13b   :  { %575 = vst [vmem:[#allocation8 + $0x8] sm:$0xff] %v573_v0 }
 0x13c   :  { %699 = shalt.err (!%p696_p6)
}
 0x13d   :  { %s700_s18 = scalar_lea.hbm %s820_s4, 256 }
 0x13e   :  { %p701_p7 = scmp.ne.s32.totalorder %s820_s4, %s700_s18  ;;  %p704_p8 = scmp.lt.u32.totalorder %s700_s18, %s820_s4 }
 0x140   :  { %p706_p9 = pnand %p704_p8, %p701_p7 }
 0x142   :  { %709 = shalt.err (!%p706_p9)
}
 0x143   :  { %585 = dma.vmem_to_hbm [thread:$0]  %s583_s3, 256, %s820_s4, [#allocation5]  }
 0x144   :  { %714 = dma.done.wait [#allocation5], 256  }
 0x145   :  { %715 = vsyncadd [#allocation5], 4294967040 }
 0x146   :  { %589 = vsyncpa [#allocation4], 1 }
 0x147   :  { %590 = vsyncpa [#allocation7], 1 }
 0x148   :  { %591 = vsyncpa [#allocation5], 1 }

</bundles_post_ra>
